<compile_context>
chip_gen: v7x
topology: tpu7x:2x2x1
jax: 0.10.0
libtpu: 0.0.40
codegen_flags: <defaults>
</compile_context>

<pallas_src>
import jax
import jax.numpy as jnp
from jax.experimental import pallas as pl
from jax.experimental.pallas import tpu as pltpu


def _round_up(x, m):
    return (x + m - 1) // m * m


def _outconv_kernel(x_ref, w_ref, b_ref, o_ref):
    # x_ref: (C_in,  tile_S)  -- channels on sublanes, spatial lane-dense
    # w_ref: (C_out, C_in)    -- resident in VMEM across all grid steps
    # b_ref: (C_out, 1)       -- resident, f32
    # o_ref: (C_out, tile_S)  -- lane-dense output; ragged last block is
    #                            masked on store by Pallas.
    acc = jnp.dot(w_ref[...], x_ref[...], preferred_element_type=jnp.float32)
    o_ref[...] = (acc + b_ref[...]).astype(o_ref.dtype)


def _vmem_capacity_bytes():
    try:
        return int(pltpu.get_tpu_info().vmem_capacity_bytes)
    except Exception:
        return 64 * 1024 * 1024  # conservative fallback (v7x per-TensorCore)


def out_conv(x, weight, bias, *, compute_dtype=None):
    """1x1x1 Conv3d (OutConv), channels-first throughout.

    Args:
      x:      (N, C_in, D, H, W)       NCDHW, matching PyTorch.
      weight: (C_out, C_in, 1, 1, 1)   PyTorch Conv3d weight layout.
      bias:   (C_out,)
      compute_dtype: storage/compute dtype for activations in the kernel
        (e.g. jnp.bfloat16).  Accumulation is always f32.  Defaults to x.dtype.
    Returns:
      (N, C_out, D, H, W) in `compute_dtype`.
    """
    n, c_in, d, h, w = x.shape
    c_out = weight.shape[0]
    s = d * h * w

    compute_dtype = jnp.dtype(compute_dtype or x.dtype)
    itemsize = compute_dtype.itemsize

    # Free, contiguous reshape (no transpose on either side).  The cast is a
    # no-op when x already arrives in compute_dtype.
    x3 = x.reshape(n, c_in, s).astype(compute_dtype)
    w2d = weight.reshape(c_out, c_in).astype(compute_dtype)
    b2d = bias.reshape(c_out, 1).astype(jnp.float32)

    # ---- Tile-size / VMEM-budget derivation --------------------------------
    vmem_cap = _vmem_capacity_bytes()           # 128 MiB v5e/v6e, 64 MiB v7x
    tile_budget = vmem_cap // 2                 # for the double-buffered blocks
    per_lane_db = 2 * (c_in + c_out) * itemsize # double-buffered x + out bytes/lane
    tile_cap = max(128, tile_budget // per_lane_db)
    target = (8 * 1024 * 1024) // max(1, c_in * itemsize)   # ~8 MiB x block
    tile_s = min(tile_cap, target, _round_up(s, 128))
    if n == 1 and s > 128:
        # Guarantee >= 2 spatial tiles so the second TensorCore (v7x) and the
        # DMA double-buffer have work even for single-batch inputs.
        tile_s = min(tile_s, max(128, _round_up((s + 1) // 2, 128)))
    tile_s = max(128, (tile_s // 128) * 128)    # multiple of 128 lanes

    grid = (n, pl.cdiv(s, tile_s))              # ragged last block: masked store

    need = (per_lane_db * tile_s
            + 2 * (w2d.size * itemsize + b2d.size * 4)
            + (1 << 20))
    vmem_limit = int(min((vmem_cap * 3) // 4, max(48 * 1024 * 1024, 2 * need)))

    cost = pl.CostEstimate(
        flops=2 * n * s * c_in * c_out,
        transcendentals=0,
        bytes_accessed=(n * s * (c_in + c_out) * itemsize
                        + w2d.size * itemsize + b2d.size * 4),
    )

    # TODO(synk): for tiny C_in/C_out (<8) an unrolled VPU broadcast-FMA with
    # SMEM-resident weights would avoid MXU push/pop latency; kept on the MXU
    # path for robustness since the op is HBM-bandwidth bound everywhere.
    out3 = pl.pallas_call(
        _outconv_kernel,
        out_shape=jax.ShapeDtypeStruct((n, c_out, s), compute_dtype),
        grid_spec=pltpu.PrefetchScalarGridSpec(
            num_scalar_prefetch=0,
            grid=grid,
            in_specs=[
                # Batch dim squeezed out of the kernel view.  NOTE: C_in is a
                # full (untiled) block -- required for ragged-S safety.
                pl.BlockSpec((None, c_in, tile_s), lambda b, i: (b, 0, i)),
                pl.BlockSpec((c_out, c_in), lambda b, i: (0, 0)),
                pl.BlockSpec((c_out, 1), lambda b, i: (0, 0)),
            ],
            out_specs=pl.BlockSpec((None, c_out, tile_s),
                                   lambda b, i: (b, 0, i)),
        ),
        compiler_params=pltpu.CompilerParams(
            dimension_semantics=("parallel", "parallel"),
            vmem_limit_bytes=vmem_limit,
        ),
        cost_estimate=cost,
    )(x3, w2d, b2d)

    return out3.reshape(n, c_out, d, h, w)


if __name__ == "__main__":
    key = jax.random.PRNGKey(0)
    k_x, k_w, k_b = jax.random.split(key, 3)

    N, C_IN, C_OUT, D, H, W = 2, 4, 3, 8, 8, 8

    x = jax.random.normal(k_x, (N, C_IN, D, H, W), dtype=jnp.float32)

    # Deterministic PyTorch-style init: U(-sqrt(k), sqrt(k)), k = 1/(C_in*1*1*1)
    bound = 1.0 / (C_IN ** 0.5)
    weight = jax.random.uniform(
        k_w, (C_OUT, C_IN, 1, 1, 1), dtype=jnp.float32,
        minval=-bound, maxval=bound)
    bias = jax.random.uniform(
        k_b, (C_OUT,), dtype=jnp.float32, minval=-bound, maxval=bound)

    # f32 path (exact parity with the PyTorch module).
    out = out_conv(x, weight, bias)
    jax.block_until_ready(out)

    ref = jnp.einsum("ncdhw,oc->nodhw", x, weight.reshape(C_OUT, C_IN)) \
        + bias[None, :, None, None, None]
    assert out.shape == (N, C_OUT, D, H, W)
    assert jnp.allclose(out, ref, atol=1e-5, rtol=1e-5)

    # Optional bf16 activation path (halves HBM traffic; f32 accumulate).
    out_bf16 = out_conv(x, weight, bias, compute_dtype=jnp.bfloat16)
    jax.block_until_ready(out_bf16)
    assert out_bf16.dtype == jnp.bfloat16
    assert jnp.allclose(out_bf16.astype(jnp.float32), ref, atol=1e-1, rtol=1e-1)

    print("KERNEL_OK")
</pallas_src>

<mosaic_0001>
module attributes {stable_mosaic.version = 11 : i64} {
  func.func @_outconv_kernel(%arg0: i32, %arg1: i32, %arg2: memref<1x4x512xf32, #tpu.memory_space<vmem>>, %arg3: memref<3x4xf32, #tpu.memory_space<vmem>>, %arg4: memref<3x1xf32, #tpu.memory_space<vmem>>, %arg5: memref<1x3x512xf32, #tpu.memory_space<vmem>>) attributes {dimension_semantics = [#tpu.dimension_semantics<parallel>, #tpu.dimension_semantics<parallel>], iteration_bounds = array<i64: 2, 1>, scalar_prefetch = 0 : i64, scratch_operands = 0 : i64, tpu.core_type = #tpu.core_type<tc>, window_params = [{transform_indices = @transform_0, window_bounds = array<i64: 1, 4, 512>}, {pipeline_mode = #tpu.pipeline_mode<synchronous>, transform_indices = @transform_1, window_bounds = array<i64: 3, 4>}, {pipeline_mode = #tpu.pipeline_mode<synchronous>, transform_indices = @transform_2, window_bounds = array<i64: 3, 1>}, {transform_indices = @transform_3, window_bounds = array<i64: 1, 3, 512>}]} {
    %c0 = arith.constant 0 : index
    %c0_0 = arith.constant 0 : index
    %0 = vector.load %arg3[%c0, %c0_0] : memref<3x4xf32, #tpu.memory_space<vmem>>, vector<3x4xf32>
    %c0_1 = arith.constant 0 : index
    %c0_2 = arith.constant 0 : index
    %c0_3 = arith.constant 0 : index
    %1 = vector.load %arg2[%c0_1, %c0_2, %c0_3] : memref<1x4x512xf32, #tpu.memory_space<vmem>>, vector<1x4x512xf32>
    %2 = vector.shape_cast %1 : vector<1x4x512xf32> to vector<4x512xf32>
    %cst = arith.constant dense<0.000000e+00> : vector<3x512xf32>
    %3 = tpu.matmul %0, %2, %cst {dimension_numbers = #tpu.dot_dimension_numbers<[1], [0], [0], [1], [0, 0, 1, 1], [], []>} : vector<3x4xf32>, vector<4x512xf32>, vector<3x512xf32> -> vector<3x512xf32>
    %c0_4 = arith.constant 0 : index
    %c0_5 = arith.constant 0 : index
    %4 = vector.load %arg4[%c0_4, %c0_5] : memref<3x1xf32, #tpu.memory_space<vmem>>, vector<3x1xf32>
    %5 = vector.broadcast %4 : vector<3x1xf32> to vector<3x512xf32>
    %6 = arith.addf %3, %5 : vector<3x512xf32>
    %c0_6 = arith.constant 0 : index
    %c0_7 = arith.constant 0 : index
    %c0_8 = arith.constant 0 : index
    %7 = vector.load %arg5[%c0_6, %c0_7, %c0_8] : memref<1x3x512xf32, #tpu.memory_space<vmem>>, vector<1x3x512xf32>
    %8 = vector.shape_cast %7 : vector<1x3x512xf32> to vector<3x512xf32>
    %9 = vector.shape_cast %6 : vector<3x512xf32> to vector<1x3x512xf32>
    tpu.vector_store %arg5[%c0_6, %c0_7, %c0_8], %9 {strides = array<i32>} : memref<1x3x512xf32, #tpu.memory_space<vmem>>, vector<1x3x512xf32>,
    return
  }
  func.func @transform_0(%arg0: i32, %arg1: i32) -> (i32, i32, i32) {
    %c0_i32 = arith.constant 0 : i32
    %c0_i32_0 = arith.constant 0 : i32
    return %arg0, %c0_i32, %arg1 : i32, i32, i32
  }
  func.func @transform_1(%arg0: i32, %arg1: i32) -> (i32, i32) {
    %c0_i32 = arith.constant 0 : i32
    %c0_i32_0 = arith.constant 0 : i32
    %c0_i32_1 = arith.constant 0 : i32
    return %c0_i32, %c0_i32_0 : i32, i32
  }
  func.func @transform_2(%arg0: i32, %arg1: i32) -> (i32, i32) {
    %c0_i32 = arith.constant 0 : i32
    %c0_i32_0 = arith.constant 0 : i32
    %c0_i32_1 = arith.constant 0 : i32
    return %c0_i32, %c0_i32_0 : i32, i32
  }
  func.func @transform_3(%arg0: i32, %arg1: i32) -> (i32, i32, i32) {
    %c0_i32 = arith.constant 0 : i32
    %c0_i32_0 = arith.constant 0 : i32
    return %arg0, %c0_i32, %arg1 : i32, i32, i32
  }
}

</mosaic_0001>

<bundles_post_ra>
// kernel: tpu_custom_call.1
= control target key start
LH: loop header
LB: loop body
LE: loop exit
PB: predicated region body
PF: predicated region fallthrough
CT: control target
= control target key end

     0   :  { %8 = vsyncpa [#allocation3], 0  ;;  %s807_s0 = inlined_call_operand.hbm [shape: f32[2,4,512], index: 0, kind: input, shape index: {}]   ;;  %s808_s1 = inlined_call_operand.vmem [shape: f32[3,4], index: 1, kind: input, shape index: {}]   ;;  %s809_s2 = inlined_call_operand.vmem [shape: f32[3,1], index: 2, kind: input, shape index: {}]   ;;  %s810_s3 = inlined_call_operand.vmem [shape: f32[2,3,512], index: 3, kind: output, shape index: {}]  }
   0x1   :  { %10 = vsyncpa [#allocation3 + $0x1], 0  ;;  %s676_s12 = smov 0   ;;  %s678_s13 = smov 0  }
   0x2   :  { %s680_s14 = smov 0   ;;  %s682_s15 = smov 0  }
   0x3   :  { %s684_s16 = smov 0   ;;  %s686_s17 = smov 0  }
   0x4 LB: > { %s490_s18 = sadd.s32 4294967295, %s651_s17   ;;  %s28_s19 = sadd.s32 1, %s647_s16  ;;  %s651_s17 = sphi %s686_s17, %s16_s17   ;;  %s647_s16 = sphi %s684_s16, %s820_s16   ;;  %s643_s15 = sphi %s682_s15, %s819_s15   ;;  %s639_s14 = sphi %s680_s14, %s818_s14   ;;  %s635_s13 = sphi %s678_s13, %s817_s13   ;;  %s631_s12 = sphi %s676_s12, %s816_s12  }
   0x5   : > { %p30_p0 = scmp.ge.s32.totalorder %s28_s19, 2  ;;  %s37_s20 = sadd.s32 1, %s639_s14 }
   0x6   : > { %p44_p1 = scmp.ne.s32.totalorder %s639_s14, %s635_s13  ;;  %p45_p2 = scmp.eq.s32.totalorder %s651_s17, 0 }
   0x7   : > { %s822_s19 = smov (%p30_p0, %s28_s19), 0  ;;  %p50_p4 = scmp.ne.s32.totalorder %s635_s13, %s631_s12 }
   0x8   : > { %p712_p3 = por %p45_p2, %p44_p1  ;;  %s32_s22 = ssub.s32 %s647_s16, %s822_s19 }
   0x9   : > { %p51_p5 = scmp.eq.s32.totalorder %s490_s18, 0  ;;  %p35_p6 = scmp.eq.s32.totalorder %s32_s22, 0 }
   0xa   : > { %p517_p8 = scmp.lt.s32.totalorder %s651_s17, 2  ;;  %s150_s25 = sand.u32 1, %s639_s14  }
   0xb   : > { %p719_p7 = por %p51_p5, %p50_p4  ;;  %s509_s26 = sshll.u32 %s647_s16, 8 }
   0xc   : > { %s725_s24 = scalar_select %p35_p6, %s639_s14, %s37_s20  }
   0xd   : > { %s494_s27 = sshll.u32 %s150_s25, 4  ;;  %s732_s30 = scalar_lea.hbm %s807_s0, %s509_s26 }
   0xe   : > { %s154_s4 = scalar_lea.vmem [#allocation2], %s494_s27  ;;  %p736_p9 = pnand %p517_p8, %p712_p3 }
   0xf   : > { %s164_s5 = sshll.u32 %s154_s4, 4  ;;  %s151_s7 = scalar_lea.sflag [#allocation3], %s150_s25  ;;  %s740_s5 = int_to_ptr.vmem [resolvable:$true] %s164_s5 }
  0x10   : > { %s571_s8 = scalar_lea.hbm %s732_s30, 256  ;;  %p573_p13 = pneg %p736_p9 }
  0x11   : > { %p572_p12 = scmp.ne.s32.totalorder %s732_s30, %s571_s8  ;;  %s576_s11 = scalar_lea.hbm %s807_s0, 512 }
  0x12   : > { %p577_p2 = scmp.lt.u32.totalorder %s732_s30, %s807_s0  ;;  %p578_p3 = scmp.lt.u32.totalorder %s576_s11, %s571_s8 }
  0x13   : > { %p574_p0 = pnand %p573_p13, %p572_p12  ;;  %p580_p5 = scmp.lt.u32.totalorder %s571_s8, %s732_s30 }
  0x14   : > { %p579_p4 = por %p578_p3, %p577_p2 }
  0x15   : > { %p575_p1 = pneg %p574_p0 }
  0x16   : > { %p581_p6 = por %p580_p5, %p579_p4 }
  0x18   : > { %p582_p8 = pnand %p581_p6, %p575_p1 }
  0x1a   : > { %585 = shalt.err (!%p582_p8)
}
  0x1b   : > { %s586_s20 = scalar_lea.vmem %s740_s5, 256  ;;  %s653_s21 = smov [#allocation2]  }
  0x1c   : > { %p587_p12 = scmp.ne.s32.totalorder %s740_s5, %s586_s20  ;;  %s591_s22 = sshll.u32 %s653_s21, 4  ;;  %s592_s22 = int_to_ptr.vmem [resolvable:$false] %s591_s22 }
  0x1d   : > { %s593_s25 = scalar_lea.vmem %s592_s22, 512  ;;  %p594_p11 = scmp.lt.s32.totalorder %s740_s5, %s592_s22 }
  0x1e   : > { %p589_p0 = pnand %p587_p12, %p573_p13  ;;  %p595_p2 = scmp.lt.s32.totalorder %s593_s25, %s586_s20 }
  0x20   : > { %p590_p10 = pneg %p589_p0  ;;  %p596_p3 = por %p595_p2, %p594_p11 }
  0x22   : > { %p597_p4 = pnand %p596_p3, %p590_p10 }
  0x24   : > { %600 = shalt.err (!%p597_p4)
}
  0x25   : > { %516 = dma.hbm_to_vmem [thread:$0]  (!%p736_p9), %s732_s30, 256, %s740_s5, %s151_s7  }
  0x26   : > { %p814_p1 = scmp.lt.s32.totalorder %s651_s17, 3  ;;  %p815_p5 = scmp.ge.s32.totalorder %s651_s17, 1 }
  0x28   : > { %p170_p13 = pnand %p815_p5, %p814_p1 }
  0x29   : > { %s175_s26 = sand.u32 (!%p170_p13), 1, %s635_s13  }
  0x2a   : > { %173 = sbr.rel (%p170_p13) target bundleno = 274 (0x112), region = 32  ;;  %s498_s27 = sshll.u32 (!%p170_p13), %s175_s26, 4 }
  0x2b   : > { %s176_s28 = scalar_lea.sflag (!%p170_p13), [#allocation3], %s175_s26  ;;  %s179_s29 = scalar_lea.vmem (!%p170_p13), [#allocation2], %s498_s27 }
  0x31   : > { %626 = dma.done.wait (%p719_p7), %s176_s28, 256  }
  0x32   : > { %628 = vsyncadd (%p719_p7), %s176_s28, 4294967040  ;;  %v654_v0 = vmov 0.0   ;;  %v655_v1 = vmov 0   ;;  %v218_v2 = vld [vmem:[%s179_s29] sm:$0xff]  ;;  %vm234_vm0 = vcmask 1043456   ;;  %v219_v3 = vld [vmem:[%s179_s29 + $0x8] sm:$0xff] }
  0x33   : > { %307 = vmatprep.mubr.f32.mxu0 %v654_v0  ;;  %378 = vmatprep.mubr.f32.mxu1 %v654_v0  ;;  %v228_v4 = vcombine.high %v218_v2, %v218_v2  ;;  %v229_v5 = vcombine.high %v219_v3, %v219_v3  ;;  %v220_v6 = vld [vmem:[%s809_s2] sm:$0x7]  ;;  %vm230_vm1 = vcmask 31744   ;;  %p208_p7 = scmp.lt.s32.totalorder %s643_s15, 1 }
  0x34   : > { %568 = vset.pattern.permute.xlu0 %v655_v1  ;;  %v217_v7 = vld [vmem:[%s808_s1] sm:$0x7] }
  0x35   : > { %223 = vperm.xlu0 %568, %v220_v6   ;;  %501 = vmatprep.subr.msk.mxu0 %vm234_vm0, %v228_v4  ;;  %s824_s15 = smov (!%p208_p7, %s643_s15), 1 }
  0x36   : > { %504 = vmatprep.subr.msk.mxu1 %vm234_vm0, %v229_v5  ;;  %502 = vmatpush1.msk.msra.mxu0 %vm234_vm0, %v218_v2  ;;  %s510_s23 = sshll.u32 %s824_s15, 4 }
  0x37   : > { %505 = vmatpush1.msk.msra.mxu1 %vm234_vm0, %v219_v3  ;;  %503 = vmatmul.mubr.msk.f32.vlgmr.msra.gmra.mrb[0].mxu0 %vm230_vm1, %v217_v7  ;;  %s215_s9 = scalar_lea.vmem %s810_s3, %s510_s23 }
  0x38   : > { %506 = vmatmul.mubr.msk.f32.vlgmr.msra.gmra.mrb[0].mxu1 %vm230_vm1, %v217_v7 }
  0xb4   : > { %v224_v8 = vpop.permute.xlu0 %223 }
 0x10a   : > { %v309_v9 = vpop.f32.mrb[0].mxu0 }
 0x10b   : > { %v380_v10 = vpop.f32.mrb[0].mxu1  ;;  %v310_v11 = vadd.f32 %v309_v9, %v224_v8  ;;  %v311_v13 = vpop.f32.mrb[1].mxu0 }
 0x10c   : > { %v381_v12 = vadd.f32 %v380_v10, %v224_v8  ;;  %v382_v14 = vpop.f32.mrb[1].mxu1  ;;  %v312_v15 = vadd.f32 %v311_v13, %v224_v8 }
 0x10d   : > { %v383_v16 = vadd.f32 %v382_v14, %v224_v8 }
 0x10e   : > { %v389_v17 = vcombine.low %v310_v11, %v312_v15 }
 0x10f   : > { %v390_v18 = vcombine.low %v381_v12, %v383_v16 }
 0x110   : > { %393 = vst [vmem:[%s215_s9] sm:$0x77] %v389_v17 }
 0x111   : > { %394 = vst [vmem:[%s215_s9 + $0x8] sm:$0x77] %v390_v18 }
 0x112 PF: > { %s16_s17 = sadd.s32 1, %s651_s17   ;;  %s816_s12 = smov %s635_s13 }
 0x113   : > { %p13_p9 = scmp.ge.s32.totalorder %s16_s17, 4   ;;  %s817_s13 = smov %s639_s14 }
 0x114   : > { %s818_s14 = smov %s725_s24  ;;  %s819_s15 = smov %s647_s16 }
 0x115   : > { %s820_s16 = smov %s822_s19  ;;  %15 = sbr.rel (!%p13_p9) target bundleno = 4 (0x4), region = 72 }
 0x11c   :  { %425 = vsyncpa [#allocation3], 1 }
 0x11d   :  { %427 = vsyncpa [#allocation3 + $0x1], 1 }

</bundles_post_ra>
